<compile_context>
chip_gen: v7x
topology: tpu7x:2x2x1
jax: 0.10.0
libtpu: 0.0.40
codegen_flags: <defaults>
</compile_context>

<pallas_src>
import functools

import jax
import jax.numpy as jnp
from jax.experimental import pallas as pl
from jax.experimental.pallas import tpu as pltpu


def _round_up(x, m):
    return ((x + m - 1) // m) * m


def _bahdanau_kernel(*refs, has_mask):
    if has_mask:
        hid_ref, mask_ref, w1_ref, b1_ref, w2_ref, b2_ref, energy_ref, comb_ref = refs
    else:
        hid_ref, w1_ref, b1_ref, w2_ref, b2_ref, energy_ref, comb_ref = refs
        mask_ref = None

    TB, T, H = hid_ref.shape
    A = w1_ref.shape[1]
    Tp = energy_ref.shape[-1]     # lane-padded output widths
    Hp = comb_ref.shape[-1]

    x = hid_ref[...]                                       # [TB, T, H] compute dtype

    # linear + tanh: one well-shaped MXU matmul over the whole batch tile,
    # f32 accumulation regardless of input dtype.
    u = jnp.dot(x.reshape(TB * T, H), w1_ref[...],
                preferred_element_type=jnp.float32)        # [TB*T, A]
    u = jnp.tanh(u + b1_ref[...])                          # [TB*T, A]

    # linear2 (A -> 1): multiply + lane reduce, landing directly in the
    # lane-dense [TB, T] layout (T on lanes).
    w2 = w2_ref[...].reshape(1, 1, A).astype(jnp.float32)
    s = jnp.sum(u.reshape(TB, T, A) * w2, axis=-1)         # [TB, T]
    s = s + b2_ref[0]                                      # scalar bias from SMEM

    # Fused softmax + mask renorm (algebraically identical to the PyTorch
    # softmax -> *mask -> /sum):  exp(s-max)*m / sum(exp(s-max)*m)
    s = s - jnp.max(s, axis=-1, keepdims=True)
    p = jnp.exp(s)
    if has_mask:
        p = p * mask_ref[...]
    alpha = p * pl.reciprocal(jnp.sum(p, axis=-1, keepdims=True), approx=True)

    # Lane-dense energy store (last dim padded to a multiple of 128).
    if Tp > T:
        alpha_st = jnp.concatenate(
            [alpha, jnp.zeros((TB, Tp - T), jnp.float32)], axis=-1)
    else:
        alpha_st = alpha
    energy_ref[...] = alpha_st

    # linear_combination[b, h] = sum_t alpha[b, t] * hidden[b, t, h]
    # Batched MXU matmul with f32 accumulation; no f32 copy of the tile.
    comb = jnp.einsum('bqt,bth->bqh',
                      alpha[:, None, :].astype(x.dtype), x,
                      preferred_element_type=jnp.float32)[:, 0, :]   # [TB, H]
    if Hp > H:
        comb = jnp.concatenate(
            [comb, jnp.zeros((TB, Hp - H), jnp.float32)], axis=-1)
    comb_ref[...] = comb


def bahdanau_attention_forward(params, hidden, mask=None, *,
                               compute_dtype=jnp.bfloat16, block_b=None):
    """hidden: [T, B, H] time-major; mask: [T, B] or None (PyTorch convention).

    Returns (energy [B, 1, T], linear_combination [B, H]), both f32."""
    T, B, H = hidden.shape
    A = params["w1"].shape[1]
    has_mask = mask is not None

    # The module's own hidden.transpose(0, 1); kernel works batch-major so the
    # softmax / energy store are lane-dense (T on the lane axis).
    x = jnp.transpose(hidden, (1, 0, 2)).astype(compute_dtype)       # [B, T, H]
    dtype_bytes = jnp.dtype(compute_dtype).itemsize

    Tp = _round_up(T, 128)     # lane-dense output padding
    Hp = _round_up(H, 128)

    # Generation-aware VMEM budget: ~48 MiB on v7x (64 MiB physical),
    # ~96 MiB on v5e/v6e (128 MiB physical).
    try:
        vmem_cap = int(pltpu.get_tpu_info().vmem_capacity_bytes)
    except Exception:
        vmem_cap = 64 * 1024 * 1024
    vmem_budget = int(vmem_cap * 3 // 4)

    if block_b is None:
        per_row = (2 * T * H * dtype_bytes                  # hidden, double-buffered
                   + (2 * T * 4 if has_mask else 0)         # mask, double-buffered
                   + 2 * (Tp + Hp) * 4)                     # outputs, double-buffered
        fixed = H * A * dtype_bytes + 16 * A + (2 << 20)    # weights + headroom
        bb = max(8, ((vmem_budget - fixed) // max(per_row, 1)) // 8 * 8)
        if B >= 32:
            # keep >= 4 grid steps so both v7x TensorCores get pipelined work
            bb = min(bb, max(8, (_round_up(B, 8) // 4) // 8 * 8))
        block_b = min(bb, _round_up(B, 8))
    block_b = max(8, _round_up(block_b, 8))

    Bp = _round_up(B, block_b)
    if Bp != B:
        x = jnp.pad(x, ((0, Bp - B), (0, 0), (0, 0)))

    w1 = params["w1"].astype(compute_dtype)        # [H, A]
    b1 = params["b1"].astype(jnp.float32)          # [1, A]
    w2 = params["w2"].astype(jnp.float32)          # [1, A]  (linear2.weight)
    b2 = params["b2"].astype(jnp.float32)          # [1]     (SMEM scalar)

    in_specs = [pl.BlockSpec((block_b, T, H), lambda i: (i, 0, 0))]
    args = [x]
    if has_mask:
        m = jnp.transpose(mask, (1, 0)).astype(jnp.float32)          # [B, T]
        if Bp != B:
            m = jnp.pad(m, ((0, Bp - B), (0, 0)), constant_values=1.0)
        in_specs.append(pl.BlockSpec((block_b, T), lambda i: (i, 0)))
        args.append(m)
    in_specs += [
        pl.BlockSpec((H, A), lambda i: (0, 0)),    # weights stay VMEM-resident
        pl.BlockSpec((1, A), lambda i: (0, 0)),
        pl.BlockSpec((1, A), lambda i: (0, 0)),
        pl.BlockSpec(memory_space=pltpu.MemorySpace.SMEM),
    ]
    args += [w1, b1, w2, b2]

    out_shapes = (jax.ShapeDtypeStruct((Bp, Tp), jnp.float32),
                  jax.ShapeDtypeStruct((Bp, Hp), jnp.float32))
    out_specs = (pl.BlockSpec((block_b, Tp), lambda i: (i, 0)),
                 pl.BlockSpec((block_b, Hp), lambda i: (i, 0)))

    kernel = functools.partial(_bahdanau_kernel, has_mask=has_mask)

    energy_bt, comb = pl.pallas_call(
        kernel,
        out_shape=out_shapes,
        grid_spec=pltpu.PrefetchScalarGridSpec(
            num_scalar_prefetch=0,
            grid=(Bp // block_b,),
            in_specs=in_specs,
            out_specs=out_specs),
        compiler_params=pltpu.CompilerParams(
            dimension_semantics=("parallel",),
            vmem_limit_bytes=int(vmem_budget)),
    )(*args)

    energy = energy_bt[:B, None, :T]       # [B, 1, T], matches PyTorch output
    comb = comb[:B, :H]                    # [B, H]
    return energy, comb


def make_params(key, hidden_dim, attn_dim):
    k1, k2, k3, k4 = jax.random.split(key, 4)
    s = 0.1
    w1_pt = jax.random.normal(k1, (attn_dim, hidden_dim), jnp.float32) * s  # linear.weight
    b1 = jax.random.normal(k2, (attn_dim,), jnp.float32) * s
    w2_pt = jax.random.normal(k3, (1, attn_dim), jnp.float32) * s           # linear2.weight
    b2 = jax.random.normal(k4, (1,), jnp.float32) * s
    return {
        "w1": w1_pt.T,           # [H, A]
        "b1": b1[None, :],       # [1, A]
        "w2": w2_pt,             # [1, A]
        "b2": b2,                # [1]
    }


def reference_forward(params, hidden, mask=None):
    """Pure-JAX reference mirroring the PyTorch forward."""
    h = jnp.transpose(hidden, (1, 0, 2))                        # [B, T, H]
    e = jnp.tanh(h @ params["w1"] + params["b1"])               # [B, T, A]
    e = e @ params["w2"].T + params["b2"]                       # [B, T, 1]
    e = jax.nn.softmax(e, axis=1)
    if mask is not None:
        m = jnp.transpose(mask, (1, 0))[:, :, None]             # [B, T, 1]
        e = e * m
        e = e / jnp.sum(e, axis=1, keepdims=True)
    energy = jnp.transpose(e, (0, 2, 1))                        # [B, 1, T]
    comb = jnp.matmul(energy, h)[:, 0, :]                       # [B, H]
    return energy, comb


if __name__ == "__main__":
    T, B = 8, 2
    H, A = 32, 16

    key = jax.random.PRNGKey(0)
    pkey, hkey = jax.random.split(key)
    params = make_params(pkey, H, A)

    hidden = jax.random.normal(hkey, (T, B, H), jnp.float32)    # time-major, like PyTorch
    mask = jnp.transpose(jnp.array([[1, 1, 1, 1, 1, 1, 0, 0],
                                    [1, 1, 1, 1, 1, 1, 1, 1]], jnp.float32), (1, 0))  # [T, B]

    ref_e, ref_c = reference_forward(params, hidden, mask)
    ref_e_nm, ref_c_nm = reference_forward(params, hidden, None)

    # default path: bf16 hidden (halved HBM bytes), f32 accumulation/softmax
    e_bf, c_bf = bahdanau_attention_forward(params, hidden, mask)
    jax.block_until_ready((e_bf, c_bf))
    assert e_bf.shape == (B, 1, T) and c_bf.shape == (B, H)
    assert jnp.allclose(e_bf, ref_e, rtol=2e-2, atol=2e-2)
    assert jnp.allclose(c_bf, ref_c, rtol=2e-2, atol=2e-2)

    # f32 path, masked
    e32, c32 = bahdanau_attention_forward(params, hidden, mask,
                                          compute_dtype=jnp.float32)
    jax.block_until_ready((e32, c32))
    assert jnp.allclose(e32, ref_e, rtol=2e-3, atol=2e-3)
    assert jnp.allclose(c32, ref_c, rtol=2e-3, atol=2e-3)

    # no-mask path (specialized kernel: no mask stream / multiply / renorm)
    e_nm, c_nm = bahdanau_attention_forward(params, hidden, None,
                                            compute_dtype=jnp.float32)
    jax.block_until_ready((e_nm, c_nm))
    assert jnp.allclose(e_nm, ref_e_nm, rtol=2e-3, atol=2e-3)
    assert jnp.allclose(c_nm, ref_c_nm, rtol=2e-3, atol=2e-3)

    # no-mask, bf16 default
    e_nm_bf, c_nm_bf = bahdanau_attention_forward(params, hidden, None)
    jax.block_until_ready((e_nm_bf, c_nm_bf))
    assert jnp.allclose(e_nm_bf, ref_e_nm, rtol=2e-2, atol=2e-2)
    assert jnp.allclose(c_nm_bf, ref_c_nm, rtol=2e-2, atol=2e-2)

    print("KERNEL_OK")
</pallas_src>

<mosaic_0001>
module attributes {stable_mosaic.version = 11 : i64} {
  func.func @_bahdanau_kernel(%arg0: i32, %arg1: memref<8x8x32xbf16, #tpu.memory_space<vmem>>, %arg2: memref<8x8xf32, #tpu.memory_space<vmem>>, %arg3: memref<32x16xbf16, #tpu.memory_space<vmem>>, %arg4: memref<1x16xf32, #tpu.memory_space<vmem>>, %arg5: memref<1x16xf32, #tpu.memory_space<vmem>>, %arg6: memref<1xf32, #tpu.memory_space<smem>>, %arg7: memref<8x128xf32, #tpu.memory_space<vmem>>, %arg8: memref<8x128xf32, #tpu.memory_space<vmem>>) attributes {dimension_semantics = [#tpu.dimension_semantics<parallel>], iteration_bounds = array<i64: 1>, scalar_prefetch = 0 : i64, scratch_operands = 0 : i64, tpu.core_type = #tpu.core_type<tc>, window_params = [{transform_indices = @transform_0, window_bounds = array<i64: 8, 8, 32>}, {transform_indices = @transform_1, window_bounds = array<i64: 8, 8>}, {pipeline_mode = #tpu.pipeline_mode<synchronous>, transform_indices = @transform_2, window_bounds = array<i64: 32, 16>}, {pipeline_mode = #tpu.pipeline_mode<synchronous>, transform_indices = @transform_3, window_bounds = array<i64: 1, 16>}, {pipeline_mode = #tpu.pipeline_mode<synchronous>, transform_indices = @transform_4, window_bounds = array<i64: 1, 16>}, {transform_indices = @transform_5, window_bounds = array<i64: 1>}, {transform_indices = @transform_6, window_bounds = array<i64: 8, 128>}, {transform_indices = @transform_7, window_bounds = array<i64: 8, 128>}]} {
    %c0 = arith.constant 0 : index
    %c0_0 = arith.constant 0 : index
    %c0_1 = arith.constant 0 : index
    %0 = vector.load %arg1[%c0, %c0_0, %c0_1] : memref<8x8x32xbf16, #tpu.memory_space<vmem>>, vector<8x8x32xbf16>
    %1 = vector.shape_cast %0 : vector<8x8x32xbf16> to vector<64x32xbf16>
    %c0_2 = arith.constant 0 : index
    %c0_3 = arith.constant 0 : index
    %2 = vector.load %arg3[%c0_2, %c0_3] : memref<32x16xbf16, #tpu.memory_space<vmem>>, vector<32x16xbf16>
    %cst = arith.constant dense<0.000000e+00> : vector<64x16xf32>
    %3 = tpu.matmul %1, %2, %cst {dimension_numbers = #tpu.dot_dimension_numbers<[1], [0], [0], [1], [0, 0, 1, 1], [], []>} : vector<64x32xbf16>, vector<32x16xbf16>, vector<64x16xf32> -> vector<64x16xf32>
    %c0_4 = arith.constant 0 : index
    %c0_5 = arith.constant 0 : index
    %4 = vector.load %arg4[%c0_4, %c0_5] : memref<1x16xf32, #tpu.memory_space<vmem>>, vector<1x16xf32>
    %5 = vector.broadcast %4 : vector<1x16xf32> to vector<64x16xf32>
    %6 = arith.addf %3, %5 : vector<64x16xf32>
    %7 = math.tanh %6 : vector<64x16xf32>
    %c0_6 = arith.constant 0 : index
    %c0_7 = arith.constant 0 : index
    %8 = vector.load %arg5[%c0_6, %c0_7] : memref<1x16xf32, #tpu.memory_space<vmem>>, vector<1x16xf32>
    %9 = vector.shape_cast %8 : vector<1x16xf32> to vector<1x1x16xf32>
    %10 = vector.shape_cast %7 : vector<64x16xf32> to vector<8x8x16xf32>
    %11 = vector.broadcast %9 : vector<1x1x16xf32> to vector<8x8x16xf32>
    %12 = arith.mulf %10, %11 : vector<8x8x16xf32>
    %cst_8 = arith.constant dense<0.000000e+00> : vector<8x8xf32>
    %13 = vector.multi_reduction <add>, %12, %cst_8 [2] : vector<8x8x16xf32> to vector<8x8xf32>
    %c0_9 = arith.constant 0 : index
    %14 = memref.load %arg6[%c0_9] : memref<1xf32, #tpu.memory_space<smem>>
    %15 = vector.broadcast %14 : f32 to vector<8x8xf32>
    %16 = arith.addf %13, %15 : vector<8x8xf32>
    %cst_10 = arith.constant dense<0xFF800000> : vector<8xf32>
    %17 = vector.multi_reduction <maximumf>, %16, %cst_10 [1] : vector<8x8xf32> to vector<8xf32>
    %18 = vector.shape_cast %17 : vector<8xf32> to vector<8x1xf32>
    %19 = vector.broadcast %18 : vector<8x1xf32> to vector<8x8xf32>
    %20 = arith.subf %16, %19 : vector<8x8xf32>
    %21 = math.exp %20 : vector<8x8xf32>
    %c0_11 = arith.constant 0 : index
    %c0_12 = arith.constant 0 : index
    %22 = vector.load %arg2[%c0_11, %c0_12] : memref<8x8xf32, #tpu.memory_space<vmem>>, vector<8x8xf32>
    %23 = arith.mulf %21, %22 : vector<8x8xf32>
    %cst_13 = arith.constant dense<0.000000e+00> : vector<8xf32>
    %24 = vector.multi_reduction <add>, %23, %cst_13 [1] : vector<8x8xf32> to vector<8xf32>
    %25 = vector.shape_cast %24 : vector<8xf32> to vector<8x1xf32>
    %26 = tpu.reciprocal %25 {approx = true} : vector<8x1xf32> -> vector<8x1xf32>
    %27 = vector.broadcast %26 : vector<8x1xf32> to vector<8x8xf32>
    %28 = arith.mulf %23, %27 : vector<8x8xf32>
    %cst_14 = arith.constant 0.000000e+00 : f32
    %29 = vector.broadcast %cst_14 : f32 to vector<8x120xf32>
    %30 = tpu.concatenate %28, %29 in 1 : vector<8x8xf32>, vector<8x120xf32> -> vector<8x128xf32>
    %c0_15 = arith.constant 0 : index
    %c0_16 = arith.constant 0 : index
    %31 = vector.load %arg7[%c0_15, %c0_16] : memref<8x128xf32, #tpu.memory_space<vmem>>, vector<8x128xf32>
    tpu.vector_store %arg7[%c0_15, %c0_16], %30 {strides = array<i32>} : memref<8x128xf32, #tpu.memory_space<vmem>>, vector<8x128xf32>,
    %32 = vector.shape_cast %28 : vector<8x8xf32> to vector<8x1x8xf32>
    %33 = arith.truncf %32 : vector<8x1x8xf32> to vector<8x1x8xbf16>
    "tpu.trace_start"() <{level = 10 : i32, message = "bqt,bth->bqh"}> : () -> ()
    %cst_17 = arith.constant dense<0.000000e+00> : vector<8x1x32xf32>
    %34 = tpu.matmul %33, %0, %cst_17 {dimension_numbers = #tpu.dot_dimension_numbers<[2], [1], [1], [2], [0, 0, 0, 1, 1, 2], [0], [0]>} : vector<8x1x8xbf16>, vector<8x8x32xbf16>, vector<8x1x32xf32> -> vector<8x1x32xf32>
    "tpu.trace_stop"() : () -> ()
    %35 = vector.shape_cast %34 : vector<8x1x32xf32> to vector<8x32xf32>
    %cst_18 = arith.constant 0.000000e+00 : f32
    %36 = vector.broadcast %cst_18 : f32 to vector<8x96xf32>
    %37 = tpu.concatenate %35, %36 in 1 : vector<8x32xf32>, vector<8x96xf32> -> vector<8x128xf32>
    %c0_19 = arith.constant 0 : index
    %c0_20 = arith.constant 0 : index
    %38 = vector.load %arg8[%c0_19, %c0_20] : memref<8x128xf32, #tpu.memory_space<vmem>>, vector<8x128xf32>
    tpu.vector_store %arg8[%c0_19, %c0_20], %37 {strides = array<i32>} : memref<8x128xf32, #tpu.memory_space<vmem>>, vector<8x128xf32>,
    return
  }
  func.func @transform_0(%arg0: i32) -> (i32, i32, i32) {
    %c0_i32 = arith.constant 0 : i32
    %c0_i32_0 = arith.constant 0 : i32
    %c0_i32_1 = arith.constant 0 : i32
    return %arg0, %c0_i32, %c0_i32_0 : i32, i32, i32
  }
  func.func @transform_1(%arg0: i32) -> (i32, i32) {
    %c0_i32 = arith.constant 0 : i32
    %c0_i32_0 = arith.constant 0 : i32
    return %arg0, %c0_i32 : i32, i32
  }
  func.func @transform_2(%arg0: i32) -> (i32, i32) {
    %c0_i32 = arith.constant 0 : i32
    %c0_i32_0 = arith.constant 0 : i32
    %c0_i32_1 = arith.constant 0 : i32
    return %c0_i32, %c0_i32_0 : i32, i32
  }
  func.func @transform_3(%arg0: i32) -> (i32, i32) {
    %c0_i32 = arith.constant 0 : i32
    %c0_i32_0 = arith.constant 0 : i32
    %c0_i32_1 = arith.constant 0 : i32
    return %c0_i32, %c0_i32_0 : i32, i32
  }
  func.func @transform_4(%arg0: i32) -> (i32, i32) {
    %c0_i32 = arith.constant 0 : i32
    %c0_i32_0 = arith.constant 0 : i32
    %c0_i32_1 = arith.constant 0 : i32
    return %c0_i32, %c0_i32_0 : i32, i32
  }
  func.func @transform_5(%arg0: i32) -> i32 {
    %c0_i32 = arith.constant 0 : i32
    %c0_i32_0 = arith.constant 0 : i32
    return %c0_i32 : i32
  }
  func.func @transform_6(%arg0: i32) -> (i32, i32) {
    %c0_i32 = arith.constant 0 : i32
    %c0_i32_0 = arith.constant 0 : i32
    return %arg0, %c0_i32 : i32, i32
  }
  func.func @transform_7(%arg0: i32) -> (i32, i32) {
    %c0_i32 = arith.constant 0 : i32
    %c0_i32_0 = arith.constant 0 : i32
    return %arg0, %c0_i32 : i32, i32
  }
}

</mosaic_0001>

<bundles_post_ra>
// kernel: tpu_custom_call.1
= control target key start
LH: loop header
LB: loop body
LE: loop exit
PB: predicated region body
PF: predicated region fallthrough
CT: control target
= control target key end

     0   :  { %14 = vsyncpa [#allocation4], 0  ;;  %s1693_s0 = inlined_call_operand.hbm [shape: bf16[8,8,32], index: 0, kind: input, shape index: {}]   ;;  %s1694_s1 = inlined_call_operand.vmem [shape: f32[8,8], index: 1, kind: input, shape index: {}]   ;;  %s1695_s2 = inlined_call_operand.vmem [shape: bf16[32,16], index: 2, kind: input, shape index: {}]   ;;  %s1696_s3 = inlined_call_operand.vmem [shape: f32[1,16], index: 3, kind: input, shape index: {}]   ;;  %s1697_s4 = inlined_call_operand.vmem [shape: f32[1,16], index: 4, kind: input, shape index: {}]   ;;  %s1698_s5 = inlined_call_operand.<no memory space> [shape: f32[1], index: 5, kind: input, shape index: {}]   ;;  %s1699_s6 = inlined_call_operand.hbm [shape: f32[8,128], index: 6, kind: output, shape index: {0}]   ;;  %s1700_s7 = inlined_call_operand.hbm [shape: f32[8,128], index: 7, kind: output, shape index: {1}]  }
   0x1   :  { %15 = vsyncpa [#allocation5], 0 }
   0x2   :  { %16 = vsyncpa [#allocation8], 0  ;;  %s1364_s24 = smov [#allocation3]   ;;  %s1292_s28 = scalar_lea.hbm %s1693_s0, 512 }
   0x3   :  { %s22_s25 = sshll.u32 %s1364_s24, 4  ;;  %p1293_p0 = scmp.ne.s32.totalorder %s1693_s0, %s1292_s28  ;;  %s23_s25 = int_to_ptr.vmem [resolvable:$true] %s22_s25 }
   0x4   :  { %p1296_p1 = scmp.lt.u32.totalorder %s1292_s28, %s1693_s0 }
   0x6   :  { %p1298_p2 = pnand %p1296_p1, %p1293_p0 }
   0x8   :  { %1301 = shalt.err (!%p1298_p2)
}
   0x9   :  { %s1302_s10 = scalar_lea.vmem %s23_s25, 512  ;;  %p1307_p4 = scmp.lt.s32.totalorder %s23_s25, %s23_s25 }
   0xa   :  { %p1303_p3 = scmp.ne.s32.totalorder %s23_s25, %s1302_s10  ;;  %p1308_p5 = scmp.lt.s32.totalorder %s1302_s10, %s1302_s10 }
   0xc   :  { %p1309_p6 = por %p1308_p5, %p1307_p4 }
   0xe   :  { %p1310_p7 = pnand %p1309_p6, %p1303_p3 }
  0x10   :  { %1313 = shalt.err (!%p1310_p7)
}
  0x11   :  { %s1365_s11 = smov 64   ;;  %s1366_s12 = smov 4  }
  0x12   :  { %28 = dma.hbm_to_vmem [thread:$0]  %s1693_s0, 512, %s23_s25, [#allocation4], %s1365_s11, %s1365_s11, %s1366_s12  }
  0x13   :  { %1358 = dma.done.wait [#allocation4], 512  }
  0x14   :  { %1359 = vsyncadd [#allocation4], 4294966784  ;;  %v1252_v0 = vld [vmem:[%s1695_s2] sm:$0xff]   ;;  %v1253_v1 = vld [vmem:[%s1695_s2 + $0x8] sm:$0xff]   ;;  %vm94_vm0 = vcmask 261120   ;;  %vm195_vm1 = vcmask 130048   ;;  %v238_v56 = vlaneseq }
  0x15   :  { %1182 = vmatprep.subr.bf16.mxu0 %v1252_v0  ;;  %v1430_v2 = vld [vmem:[#allocation3] sm:$0xf]  ;;  %v1432_v3 = vld [vmem:[#allocation3 + $0x4] sm:$0xf]  ;;  %v1436_v5 = vld [vmem:[#allocation3 + $0x8] sm:$0xf] }
  0x16   :  { %1183 = vmatpush3.bf16.msra.mxu0 %v1252_v0  ;;  %v1141_v4 = vcombine.low %v1430_v2, %v1432_v3  ;;  %v1438_v6 = vld [vmem:[#allocation3 + $0xc] sm:$0xf]  ;;  %v1440_v7 = vld [vmem:[#allocation3 + $0x10] sm:$0xf]  ;;  %v1442_v8 = vld [vmem:[#allocation3 + $0x14] sm:$0xf] }
  0x17   :  { %1184 = vmatprep.subr.bf16.mxu0 %v1253_v1  ;;  %v1142_v9 = vcombine.low %v1436_v5, %v1438_v6  ;;  %v1143_v10 = vcombine.low %v1440_v7, %v1442_v8  ;;  %v1451_v11 = vld [vmem:[#allocation3 + $0x18] sm:$0xf]  ;;  %v1453_v12 = vld [vmem:[#allocation3 + $0x1c] sm:$0xf]  ;;  %v1140_v14 = vld [vmem:[%s1696_s3] ss:$0 sm:$0xff] }
  0x18   :  { %1186 = vmatprep.mubr.msk.bf16.mxu0 %vm94_vm0, %v1141_v4  ;;  %v1144_v13 = vcombine.low %v1451_v11, %v1453_v12  ;;  %v1151_v30 = vld [vmem:[%s1697_s4] ss:$0 sm:$0xff]  ;;  %v1472_v57 = vshrl.u32 %v238_v56, 7  ;;  %vm272_vm2 = vcmask 1041409   ;;  %vm274_vm3 = vcmask 1042434  }
  0x19   :  { %v1480_v59 = vld [vmem:[%s1694_s1] sm:$0xff]  ;;  %vm276_vm4 = vcmask 1043459   ;;  %vm278_vm5 = vcmask 1044484   ;;  %vm280_vm6 = vcmask 1045509   ;;  %vm282_vm7 = vcmask 1046534  }
  0x1a   :  { %1185 = vmatpush3.bf16.msra.mxu0 %v1253_v1  ;;  %v1475_v58 = vsub.s32 0, %v1472_v57  ;;  %v1483_v60 = vsub.s32 2, %v1472_v57  ;;  %v1490_v63 = vsub.s32 3, %v1472_v57  ;;  %v1495_v1 = vsub.s32 4, %v1472_v57 }
  0x1b   :  { %vm284_vm8 = vcmask 1047559   ;;  %vm287_vm9 = vcmask 64512   ;;  %vm650_vm10 = vcmask 1043456   ;;  %vm1369_vm11 = vmmov 0  }
  0x1c   :  { %v361_v61 = vrot.slane %v1480_v59, %v1475_v58  ;;  %v375_v62 = vrot.slane %v1480_v59, %v1483_v60  ;;  %v382_v0 = vrot.slane %v1480_v59, %v1490_v63  ;;  %v389_v4 = vrot.slane %v1480_v59, %v1495_v1 }
  0x1d   :  { %1187 = vmatmul.mubr.msk.bf16.vlgmr.msra.gmra.mrb[0].mxu0 %vm94_vm0, %v1142_v9  ;;  %v1500_v9 = vsub.s32 6, %v1472_v57 }
  0x1e   :  { %1190 = vmatprep.mubr.msk.bf16.mxu0 %vm94_vm0, %v1143_v10 }
  0x1f   :  { %v403_v10 = vrot.slane %v1480_v59, %v1500_v9 }
  0x25   :  { %1191 = vmatmul.mubr.msk.bf16.gmra.mrb[4].mxu0 %vm94_vm0, %v1144_v13  ;;  %v239_v13 = vand.u32 127, %v238_v56 }
  0xf0   :  { %v1188_v15 = vpop.f32.mrb[0].mxu0 }
  0xf1   :  { %v150_v16 = vadd.f32 %v1188_v15, %v1140_v14  ;;  %v141_v17 = vpop.f32.mrb[1].mxu0  ;;  %v221_v15 = vstv %s1698_s5  ;;  %s1370_s5 = smov [#allocation6]  }
  0xf2   :  { %v142_v18 = vadd.f32 %v1140_v14, %v141_v17  ;;  %v1189_v19 = vpop.f32.mrb[2].mxu0  ;;  %v1508_v17 = vsub.s32 %v239_v13, %v1472_v57  ;;  %s1117_s22 = sshll.u32 %s1370_s5, 4  ;;  %s1118_s22 = int_to_ptr.vmem [resolvable:$true] %s1117_s22 }
  0xf3   :  { %1258 = vtanh.f32 %v150_v16  ;;  %v153_v20 = vadd.f32 %v1189_v19, %v1140_v14  ;;  %v144_v21 = vpop.f32.mrb[3].mxu0  ;;  %s1314_s23 = scalar_lea.vmem %s1118_s22, 128  ;;  %p1319_p9 = scmp.lt.s32.totalorder %s1118_s22, %s1118_s22 }
  0xf4   :  { %1260 = vtanh.f32 %v142_v18  ;;  %v145_v22 = vadd.f32 %v1140_v14, %v144_v21  ;;  %p1315_p8 = scmp.ne.s32.totalorder %s1118_s22, %s1314_s23  ;;  %p1320_p10 = scmp.lt.s32.totalorder %s1314_s23, %s1314_s23 }
  0xf5   :  { %1262 = vtanh.f32 %v153_v20 }
  0xf6   :  { %1264 = vtanh.f32 %v145_v22  ;;  %p1321_p11 = por %p1320_p10, %p1319_p9 }
  0xf8   :  { %v1192_v23 = vpop.f32.mrb[4].mxu0  ;;  %p1322_p12 = pnand %p1321_p11, %p1315_p8 }
  0xf9   :  { %v166_v24 = vadd.f32 %v1192_v23, %v1140_v14  ;;  %v157_v25 = vpop.f32.mrb[5].mxu0 }
  0xfa   :  { %v158_v26 = vadd.f32 %v1140_v14, %v157_v25  ;;  %v1193_v27 = vpop.f32.mrb[6].mxu0 }
  0xfb   :  { %1266 = vtanh.f32 %v166_v24  ;;  %v169_v28 = vadd.f32 %v1193_v27, %v1140_v14  ;;  %v160_v29 = vpop.f32.mrb[7].mxu0 }
  0xfc   :  { %1268 = vtanh.f32 %v158_v26  ;;  %v161_v31 = vadd.f32 %v1140_v14, %v160_v29 }
  0xfd   :  { %v1259_v32 = vpop.eup %1258  ;;  %1270 = vtanh.f32 %v169_v28 }
  0xfe   :  { %v1261_v33 = vpop.eup %1260  ;;  %1272 = vtanh.f32 %v161_v31  ;;  %v189_v34 = vmul.f32 %v1259_v32, %v1151_v30 }
  0xff   :  { %v1263_v35 = vpop.eup %1262  ;;  %v187_v36 = vmul.f32 %v1261_v33, %v1151_v30 }
 0x100   :  { %v1265_v37 = vpop.eup %1264  ;;  %v202_v38 = vsel %vm195_vm1, %v189_v34, 0.0  ;;  %v190_v39 = vmul.f32 %v1263_v35, %v1151_v30 }
 0x101   :  { %203 = vadd.xlane.f32.xlu1 %v202_v38  ;;  %v196_v40 = vsel %vm195_vm1, %v187_v36, 0.0  ;;  %v188_v41 = vmul.f32 %v1265_v37, %v1151_v30 }
 0x102   :  { %197 = vadd.xlane.f32.xlu0 %v196_v40  ;;  %v205_v42 = vsel %vm195_vm1, %v190_v39, 0.0 }
 0x103   :  { %v199_v44 = vsel %vm195_vm1, %v188_v41, 0.0 }
 0x105   :  { %v1267_v43 = vpop.eup %1266  ;;  %206 = vadd.xlane.f32.xlu1 %v205_v42 }
 0x106   :  { %v1269_v45 = vpop.eup %1268  ;;  %200 = vadd.xlane.f32.xlu0 %v199_v44  ;;  %v193_v51 = vmul.f32 %v1267_v43, %v1151_v30 }
 0x107   :  { %v1271_v46 = vpop.eup %1270  ;;  %v191_v47 = vmul.f32 %v1269_v45, %v1151_v30 }
 0x108   :  { %v1273_v48 = vpop.eup %1272  ;;  %v194_v53 = vmul.f32 %v1271_v46, %v1151_v30  ;;  %v214_v54 = vsel %vm195_vm1, %v193_v51, 0.0 }
 0x109   :  { %v208_v49 = vsel %vm195_vm1, %v191_v47, 0.0  ;;  %v192_v50 = vmul.f32 %v1273_v48, %v1151_v30  ;;  %v1527_v48 = vsub.s32 1, %v1472_v57 }
 0x10a   :  { %209 = vadd.xlane.f32.xlu0 %v208_v49  ;;  %v217_v55 = vsel %vm195_vm1, %v194_v53, 0.0 }
 0x10b   :  { %v211_v52 = vsel %vm195_vm1, %v192_v50, 0.0  ;;  %v368_v49 = vrot.slane %v1480_v59, %v1527_v48  ;;  %v1532_v50 = vsub.s32 5, %v1472_v57 }
 0x10c   :  { %212 = vadd.xlane.f32.xlu1 %v211_v52  ;;  %v1537_v52 = vsub.s32 7, %v1472_v57 }
 0x10d   :  { %v396_v51 = vrot.slane %v1480_v59, %v1532_v50 }
 0x10e   :  { %215 = vadd.xlane.f32.xlu0 %v214_v54  ;;  %v410_v53 = vrot.slane %v1480_v59, %v1537_v52  ;;  %v1367_v54 = vmov 0  }
 0x10f   :  { %1251 = vset.pattern.permute.xlu0 %v1367_v54  ;;  %1250 = vset.pattern.permute.xlu1 %v1367_v54 }
 0x110   :  { %218 = vadd.xlane.f32.xlu1 %v217_v55 }
 0x121   :  { %363 = vbcast.lane.b32.xlu1 %v361_v61, 256 }
 0x125   :  { %377 = vbcast.lane.b32.xlu1 %v375_v62, 256 }
 0x129   :  { %384 = vbcast.lane.b32.xlu1 %v382_v0, 256 }
 0x12d   :  { %391 = vbcast.lane.b32.xlu1 %v389_v4, 256 }
 0x131   :  { %405 = vbcast.lane.b32.xlu1 %v403_v10, 256 }
 0x18e   :  { %v204_v14 = vpop.xlane.xlu1 %203 }
 0x18f   :  { %v198_v16 = vpop.xlane.xlu0 %197  ;;  %v224_v20 = vadd.f32 %v221_v15, %v204_v14 }
 0x190   :  { %v222_v18 = vadd.f32 %v221_v15, %v198_v16 }
 0x191   :  { %v251_v26 = vrot.slane %v224_v20, %v1508_v17 }
 0x192   :  { %v207_v19 = vpop.xlane.xlu1 %206  ;;  %v243_v24 = vrot.slane %v222_v18, %v1508_v17 }
 0x193   :  { %v201_v21 = vpop.xlane.xlu0 %200  ;;  %v225_v22 = vadd.f32 %v221_v15, %v207_v19 }
 0x194   :  { %v223_v23 = vadd.f32 %v221_v15, %v201_v21 }
 0x195   :  { %v255_v28 = vrot.slane %v225_v22, %v1508_v17 }
 0x196   :  { %v247_v25 = vrot.slane %v223_v23, %v1508_v17 }
 0x197   :  { %v210_v27 = vpop.xlane.xlu0 %209 }
 0x198   :  { %v273_v29 = vsel %vm272_vm2, %v247_v25, %v243_v24  ;;  %v226_v30 = vadd.f32 %v221_v15, %v210_v27 }
 0x199   :  { %v275_v31 = vsel %vm274_vm3, %v251_v26, %v273_v29  ;;  %v213_v32 = vpop.xlane.xlu1 %212 }
 0x19a   :  { %v277_v33 = vsel %vm276_vm4, %v255_v28, %v275_v31  ;;  %v259_v34 = vrot.slane %v226_v30, %v1508_v17  ;;  %v227_v35 = vadd.f32 %v221_v15, %v213_v32 }
 0x19b   :  { %v216_v36 = vpop.xlane.xlu0 %215 }
 0x19c   :  { %v279_v37 = vsel %vm278_vm5, %v259_v34, %v277_v33  ;;  %v263_v38 = vrot.slane %v227_v35, %v1508_v17  ;;  %v228_v39 = vadd.f32 %v221_v15, %v216_v36 }
 0x19d   :  { %v219_v40 = vpop.xlane.xlu1 %218 }
 0x19e   :  { %v267_v41 = vrot.slane %v228_v39, %v1508_v17  ;;  %v229_v42 = vadd.f32 %v221_v15, %v219_v40  ;;  %v281_v43 = vsel %vm280_vm6, %v263_v38, %v279_v37 }
 0x1a0   :  { %v271_v44 = vrot.slane %v229_v42, %v1508_v17  ;;  %v283_v45 = vsel %vm282_vm7, %v267_v41, %v281_v43 }
 0x1a1   :  { %v364_v4 = vpop.permute.xlu1 %363 }
 0x1a2   :  { %v285_v46 = vsel %vm284_vm8, %v271_v44, %v283_v45 }
 0x1a3   :  { %v288_v47 = vsel %vm287_vm9, %v285_v46, -inf }
 0x1a4   :  { %289 = vmax.xlane.f32.xlu0 %v288_v47 }
 0x1a5   :  { %v378_v26 = vpop.permute.xlu1 %377 }
 0x1a9   :  { %v385_v32 = vpop.permute.xlu1 %384 }
 0x1ba   :  { %370 = vbcast.lane.b32.xlu0 %v368_v49, 256 }
 0x1be   :  { %398 = vbcast.lane.b32.xlu0 %v396_v51, 256 }
 0x1c2   :  { %412 = vbcast.lane.b32.xlu0 %v410_v53, 256 }
 0x231   :  { %v290_v55 = vpop.xlane.xlu0 %289 }
 0x232   :  { %v295_v56 = vrot.slane %v290_v55, %v1475_v58  ;;  %v303_v61 = vrot.slane %v290_v55, %v1483_v60  ;;  %v307_v62 = vrot.slane %v290_v55, %v1490_v63  ;;  %v299_v0 = vrot.slane %v290_v55, %v1527_v48 }
 0x233   :  { %v311_v57 = vrot.slane %v290_v55, %v1495_v1  ;;  %v319_v15 = vrot.slane %v290_v55, %v1500_v9  ;;  %v315_v24 = vrot.slane %v290_v55, %v1532_v50 }
 0x234   :  { %v332_v10 = vsub.f32 %v222_v18, %v295_v56  ;;  %v334_v13 = vsub.f32 %v224_v20, %v303_v61  ;;  %v333_v14 = vsub.f32 %v223_v23, %v299_v0  ;;  %v335_v21 = vsub.f32 %v225_v22, %v307_v62 }
 0x235   :  { %v336_v59 = vsub.f32 %v226_v30, %v311_v57  ;;  %v338_v28 = vsub.f32 %v228_v39, %v319_v15  ;;  %v337_v31 = vsub.f32 %v227_v35, %v315_v24  ;;  %v323_v18 = vrot.slane %v290_v55, %v1537_v52  ;;  %v371_v37 = vpop.permute.xlu0 %370  ;;  %v392_v39 = vpop.permute.xlu1 %391 }
 0x236   :  { %v340_v16 = vmul.f32 1.442695, %v332_v10  ;;  %v344_v19 = vmul.f32 1.442695, %v334_v13  ;;  %v342_v25 = vmul.f32 1.442695, %v333_v14 }
 0x237   :  { %v348_v27 = vmul.f32 1.442695, %v336_v59  ;;  %v346_v29 = vmul.f32 1.442695, %v335_v21  ;;  %v352_v20 = vmul.f32 1.442695, %v338_v28  ;;  %v339_v30 = vsub.f32 %v229_v42, %v323_v18 }
 0x238   :  { %1274 = vpow2.f32 %v340_v16  ;;  %v350_v23 = vmul.f32 1.442695, %v337_v31 }
 0x239   :  { %1276 = vpow2.f32 %v344_v19  ;;  %v354_v33 = vmul.f32 1.442695, %v339_v30  ;;  %v399_v44 = vpop.permute.xlu0 %398  ;;  %v406_v47 = vpop.permute.xlu1 %405 }
 0x23a   :  { %1278 = vpow2.f32 %v342_v25 }
 0x23b   :  { %1280 = vpow2.f32 %v348_v27 }
 0x23c   :  { %1282 = vpow2.f32 %v346_v29 }
 0x23d   :  { %1284 = vpow2.f32 %v352_v20  ;;  %v413_v55 = vpop.permute.xlu0 %412 }
 0x23e   :  { %1286 = vpow2.f32 %v350_v23 }
 0x23f   :  { %1288 = vpow2.f32 %v354_v33 }
 0x242   :  { %v1275_v22 = vpop.eup %1274 }
 0x243   :  { %v1549_v34 = vmul.f32 %v1275_v22, %v364_v4  ;;  %v1277_v36 = vpop.eup %1276 }
 0x244   :  { %v1279_v38 = vpop.eup %1278  ;;  %v1552_v41 = vmul.f32 %v1277_v36, %v378_v26 }
 0x245   :  { %439 = vperm.xlu1 %1250, %v1549_v34   ;;  %v423_v35 = vmul.f32 %v1279_v38, %v371_v37  ;;  %v1281_v40 = vpop.eup %1280 }
 0x246   :  { %v1283_v43 = vpop.eup %1282  ;;  %v1555_v42 = vmul.f32 %v1281_v40, %v392_v39 }
 0x247   :  { %442 = vperm.xlu0 %1251, %v423_v35   ;;  %v1285_v45 = vpop.eup %1284  ;;  %v425_v46 = vmul.f32 %v1283_v43, %v385_v32  ;;  %v1368_v32 = vmov 0.0  }
 0x248   :  { %v1287_v49 = vpop.eup %1286  ;;  %v428_v51 = vmul.f32 %v1285_v45, %v406_v47  ;;  %1194 = vmatprep.subr.bf16.mxu1 %v1368_v32  ;;  %1212 = vmatprep.subr.bf16.mxu0 %v1368_v32 }
 0x249   :  { %445 = vperm.xlu1 %1250, %v1552_v41   ;;  %v1558_v53 = vmul.f32 %v1287_v49, %v399_v44  ;;  %v1289_v54 = vpop.eup %1288  ;;  %1196 = vmatprep.mubr.msk.bf16.mxu1 %vm1369_vm11, %v1368_v32 }
 0x24a   :  { %v429_v56 = vmul.f32 %v1289_v54, %v413_v55  ;;  %1214 = vmatprep.mubr.msk.bf16.mxu0 %vm1369_vm11, %v1368_v32 }
 0x24b   :  { %451 = vperm.xlu0 %1251, %v1555_v42  }
 0x24d   :  { %448 = vperm.xlu1 %1250, %v425_v46  }
 0x24f   :  { %457 = vperm.xlu0 %1251, %v428_v51  }
 0x251   :  { %454 = vperm.xlu1 %1250, %v1558_v53  }
 0x255   :  { %460 = vperm.xlu1 %1250, %v429_v56  }
 0x2c4   :  { %v440_v61 = vpop.permute.xlu1 %439 }
 0x2c5   :  { %v465_v4 = vrot.slane %v440_v61, %v1508_v17 }
 0x2c6   :  { %v443_v62 = vpop.permute.xlu0 %442 }
 0x2c7   :  { %v469_v57 = vrot.slane %v443_v62, %v1508_v17 }
 0x2c8   :  { %v446_v0 = vpop.permute.xlu1 %445 }
 0x2c9   :  { %v473_v10 = vrot.slane %v446_v0, %v1508_v17  ;;  %v494_v59 = vsel %vm272_vm2, %v469_v57, %v465_v4 }
 0x2ca   :  { %v452_v13 = vpop.permute.xlu0 %451 }
 0x2cb   :  { %v495_v16 = vsel %vm274_vm3, %v473_v10, %v494_v59  ;;  %v481_v21 = vrot.slane %v452_v13, %v1508_v17 }
 0x2cc   :  { %v449_v14 = vpop.permute.xlu1 %448 }
 0x2cd   :  { %v477_v15 = vrot.slane %v449_v14, %v1508_v17  ;;  %v708_v14 = vsel %vm650_vm10, %v1432_v3, 0 }
 0x2ce   :  { %v458_v25 = vpop.permute.xlu0 %457 }
 0x2cf   :  { %v496_v19 = vsel %vm276_vm4, %v477_v15, %v495_v16  ;;  %v489_v29 = vrot.slane %v458_v25, %v1508_v17 }
 0x2d0   :  { %v455_v24 = vpop.permute.xlu1 %454  ;;  %v497_v27 = vsel %vm278_vm5, %v481_v21, %v496_v19  ;;  %v764_v21 = vsel %vm650_vm10, %v1436_v5, 0 }
 0x2d1   :  { %v485_v26 = vrot.slane %v455_v24, %v1508_v17 }
 0x2d3   :  { %v498_v28 = vsel %vm280_vm6, %v485_v26, %v497_v27  ;;  %v932_v27 = vsel %vm650_vm10, %v1442_v8, 0 }
 0x2d4   :  { %v461_v31 = vpop.permute.xlu1 %460  ;;  %v499_v20 = vsel %vm282_vm7, %v489_v29, %v498_v28  ;;  %v876_v29 = vsel %vm650_vm10, %v1440_v7, 0 }
 0x2d5   :  { %v493_v18 = vrot.slane %v461_v31, %v1508_v17 }
 0x2d7   :  { %v500_v23 = vsel %vm284_vm8, %v493_v18, %v499_v20 }
 0x2d8   :  { %v502_v30 = vsel %vm287_vm9, %v500_v23, 0.0  ;;  %v1044_v23 = vsel %vm650_vm10, %v1453_v12, 0 }
 0x2d9   :  { %503 = vadd.xlane.f32.xlu0 %v502_v30 }
 0x366   :  { %v504_v22 = vpop.xlane.xlu0 %503 }
 0x367   :  { %1290 = vrcp.f32 %v504_v22 }
 0x371   :  { %v1291_v33 = vpop.eup %1290 }
 0x372   :  { %v538_v36 = vrot.slane %v1291_v33, %v1537_v52  ;;  %v510_v37 = vrot.slane %v1291_v33, %v1475_v58  ;;  %v514_v38 = vrot.slane %v1291_v33, %v1527_v48  ;;  %v518_v44 = vrot.slane %v1291_v33, %v1483_v60 }
 0x373   :  { %v534_v49 = vrot.slane %v1291_v33, %v1500_v9  ;;  %v522_v54 = vrot.slane %v1291_v33, %v1490_v63  ;;  %v652_v60 = vsel %vm650_vm10, %v1430_v2, 0  ;;  %v530_v63 = vrot.slane %v1291_v33, %v1532_v50 }
 0x374   :  { %v554_v39 = vmul.f32 %v538_v36, %v429_v56  ;;  %v547_v40 = vmul.f32 %v510_v37, %v1549_v34  ;;  %v548_v43 = vmul.f32 %v514_v38, %v423_v35  ;;  %v549_v52 = vmul.f32 %v518_v44, %v1552_v41  ;;  %1195 = vmatpush3.bf16.msra.mxu1 %v652_v60 }
 0x375   :  { %v553_v58 = vmul.f32 %v534_v49, %v428_v51  ;;  %v550_v48 = vmul.f32 %v522_v54, %v425_v46  ;;  %v526_v34 = vrot.slane %v1291_v33, %v1495_v1  ;;  %1200 = vmatprep.subr.bf16.mxu1 %v1368_v32  ;;  %v820_v2 = vsel %vm650_vm10, %v1438_v6, 0 }
 0x376   :  { %v636_v45 = vpack.c.bf16 %v554_v39, %v554_v39  ;;  %v629_v47 = vpack.c.bf16 %v547_v40, %v547_v40  ;;  %v630_v62 = vpack.c.bf16 %v548_v43, %v548_v43  ;;  %v631_v56 = vpack.c.bf16 %v549_v52, %v549_v52  ;;  %1213 = vmatpush3.bf16.msra.mxu0 %v820_v2 }
 0x377   :  { %v632_v1 = vpack.c.bf16 %v550_v48, %v550_v48  ;;  %v551_v41 = vmul.f32 %v526_v34, %v1555_v42  ;;  %1224 = vmatprep.subr.bf16.mxu0 %v1368_v32  ;;  %v552_v0 = vmul.f32 %v530_v63, %v1558_v53  ;;  %v635_v10 = vpack.c.bf16 %v553_v58, %v553_v58 }
 0x378   :  { %v1031_v55 = vunpack.c.l.b16 %v636_v45  ;;  %v638_v61 = vunpack.c.l.b16 %v629_v47  ;;  %v695_v35 = vunpack.c.l.b16 %v630_v62  ;;  %v751_v9 = vunpack.c.l.b16 %v631_v56 }
 0x379   :  { %v807_v46 = vunpack.c.l.b16 %v632_v1  ;;  %v633_v51 = vpack.c.bf16 %v551_v41, %v551_v41  ;;  %v634_v4 = vpack.c.bf16 %v552_v0, %v552_v0  ;;  %v975_v42 = vunpack.c.l.b16 %v635_v10 }
 0x37a   :  { %1033 = vperm.xlu0 %1251, %v1031_v55   ;;  %640 = vperm.xlu1 %1250, %v638_v61   ;;  %v988_v36 = vsel %vm650_vm10, %v1451_v11, 0 }
 0x37b   :  { %v863_v50 = vunpack.c.l.b16 %v633_v51  ;;  %v919_v57 = vunpack.c.l.b16 %v634_v4 }
 0x37e   :  { %582 = vperm.xlu0 %1251, %v553_v58   ;;  %697 = vperm.xlu1 %1250, %v695_v35  }
 0x382   :  { %753 = vperm.xlu1 %1250, %v751_v9  }
 0x386   :  { %809 = vperm.xlu1 %1250, %v807_v46  }
 0x38a   :  { %865 = vperm.xlu1 %1250, %v863_v50  }
 0x38e   :  { %921 = vperm.xlu1 %1250, %v919_v57  }
 0x392   :  { %977 = vperm.xlu1 %1250, %v975_v42  }
 0x396   :  { %564 = vperm.xlu1 %1250, %v547_v40  }
 0x39a   :  { %567 = vperm.xlu1 %1250, %v548_v43  }
 0x39e   :  { %570 = vperm.xlu1 %1250, %v549_v52  }
 0x3a2   :  { %573 = vperm.xlu1 %1250, %v550_v48  }
 0x3a6   :  { %576 = vperm.xlu1 %1250, %v551_v41  }
 0x3aa   :  { %579 = vperm.xlu1 %1250, %v552_v0  }
 0x3ae   :  { %585 = vperm.xlu1 %1250, %v554_v39  }
 0x3f9   :  { %v641_v6 = vpop.permute.xlu1 %640  ;;  %v1034_v7 = vpop.permute.xlu0 %1033 }
 0x3fa   :  { %v645_v13 = vrot.slane %v641_v6, %v1508_v17  ;;  %v1038_v22 = vrot.slane %v1034_v7, %v1508_v17 }
 0x3fc   :  { %v646_v53 = vpack.c.b16 %v645_v13, %v645_v13  ;;  %v1039_v12 = vpack.c.b16 %v1038_v22, %v1038_v22 }
 0x3fd   :  { %v698_v59 = vpop.permute.xlu1 %697  ;;  %v583_v52 = vpop.permute.xlu0 %582 }
 0x3fe   :  { %1197 = vmatmul.mubr.msk.bf16.vlgmr.msra.gmra.mrb[0].mxu1 %vm287_vm9, %v646_v53  ;;  %v702_v15 = vrot.slane %v698_v59, %v1508_v17  ;;  %v614_v56 = vrot.slane %v583_v52, %v1508_v17 }
 0x3ff   :  { %1201 = vmatpush3.bf16.msra.mxu1 %v708_v14  ;;  %1202 = vmatprep.mubr.msk.bf16.mxu1 %vm1369_vm11, %v1368_v32 }
 0x400   :  { %1206 = vmatprep.subr.bf16.mxu1 %v1368_v32  ;;  %v703_v19 = vpack.c.b16 %v702_v15, %v702_v15 }
 0x401   :  { %v754_v16 = vpop.permute.xlu1 %753 }
 0x402   :  { %v758_v3 = vrot.slane %v754_v16, %v1508_v17 }
 0x404   :  { %v759_v5 = vpack.c.b16 %v758_v3, %v758_v3 }
 0x405   :  { %v810_v24 = vpop.permute.xlu1 %809 }
 0x406   :  { %v814_v25 = vrot.slane %v810_v24, %v1508_v17  ;;  %1203 = vmatmul.mubr.msk.bf16.vlgmr.msra.gmra.mrb[4].mxu1 %vm287_vm9, %v703_v19 }
 0x407   :  { %1207 = vmatpush3.bf16.msra.mxu1 %v764_v21  ;;  %1208 = vmatprep.mubr.msk.bf16.mxu1 %vm1369_vm11, %v1368_v32 }
 0x408   :  { %v815_v26 = vpack.c.b16 %v814_v25, %v814_v25  ;;  %1218 = vmatprep.subr.bf16.mxu1 %v1368_v32 }
 0x409   :  { %v866_v28 = vpop.permute.xlu1 %865 }
 0x40a   :  { %1215 = vmatmul.mubr.msk.bf16.vlgmr.msra.gmra.mrb[8].mxu0 %vm287_vm9, %v815_v26  ;;  %v870_v8 = vrot.slane %v866_v28, %v1508_v17 }
 0x40b   :  { %1225 = vmatpush3.bf16.msra.mxu0 %v932_v27  ;;  %1226 = vmatprep.mubr.msk.bf16.mxu0 %vm1369_vm11, %v1368_v32 }
 0x40c   :  { %1236 = vmatprep.subr.bf16.mxu0 %v1368_v32  ;;  %v871_v33 = vpack.c.b16 %v870_v8, %v870_v8 }
 0x40d   :  { %v922_v31 = vpop.permute.xlu1 %921 }
 0x40e   :  { %v926_v18 = vrot.slane %v922_v31, %v1508_v17  ;;  %1209 = vmatmul.mubr.msk.bf16.vlgmr.msra.gmra.mrb[8].mxu1 %vm287_vm9, %v759_v5 }
 0x40f   :  { %1219 = vmatpush3.bf16.msra.mxu1 %v876_v29  ;;  %1220 = vmatprep.mubr.msk.bf16.mxu1 %vm1369_vm11, %v1368_v32 }
 0x410   :  { %v927_v20 = vpack.c.b16 %v926_v18, %v926_v18  ;;  %1230 = vmatprep.subr.bf16.mxu1 %v1368_v32 }
 0x411   :  { %v978_v30 = vpop.permute.xlu1 %977 }
 0x412   :  { %1227 = vmatmul.mubr.msk.bf16.vlgmr.msra.gmra.mrb[12].mxu0 %vm287_vm9, %v927_v20  ;;  %v982_v38 = vrot.slane %v978_v30, %v1508_v17 }
 0x413   :  { %1237 = vmatpush3.bf16.msra.mxu0 %v1044_v23  ;;  %1238 = vmatprep.mubr.msk.bf16.mxu0 %vm1369_vm11, %v1368_v32 }
 0x414   :  { %v983_v40 = vpack.c.b16 %v982_v38, %v982_v38 }
 0x415   :  { %v565_v37 = vpop.permute.xlu1 %564 }
 0x416   :  { %1221 = vmatmul.mubr.msk.bf16.vlgmr.msra.gmra.mrb[12].mxu1 %vm287_vm9, %v871_v33  ;;  %v590_v49 = vrot.slane %v565_v37, %v1508_v17 }
 0x417   :  { %1231 = vmatpush3.bf16.msra.mxu1 %v988_v36  ;;  %1232 = vmatprep.mubr.msk.bf16.mxu1 %vm1369_vm11, %v1368_v32 }
 0x419   :  { %v568_v39 = vpop.permute.xlu1 %567 }
 0x41a   :  { %1239 = vmatmul.mubr.msk.bf16.vlgmr.msra.gmra.mrb[16].mxu0 %vm287_vm9, %v1039_v12  ;;  %v594_v11 = vrot.slane %v568_v39, %v1508_v17 }
 0x41c   :  { %v619_v55 = vsel %vm272_vm2, %v594_v11, %v590_v49 }
 0x41d   :  { %v571_v43 = vpop.permute.xlu1 %570 }
 0x41e   :  { %1233 = vmatmul.mubr.msk.bf16.vlgmr.msra.gmra.mrb[16].mxu1 %vm287_vm9, %v983_v40  ;;  %v598_v45 = vrot.slane %v571_v43, %v1508_v17 }
 0x420   :  { %v620_v61 = vsel %vm274_vm3, %v598_v45, %v619_v55 }
 0x421   :  { %v574_v44 = vpop.permute.xlu1 %573 }
 0x422   :  { %v602_v32 = vrot.slane %v574_v44, %v1508_v17 }
 0x424   :  { %v621_v58 = vsel %vm276_vm4, %v602_v32, %v620_v61 }
 0x425   :  { %v577_v47 = vpop.permute.xlu1 %576 }
 0x426   :  { %v606_v54 = vrot.slane %v577_v47, %v1508_v17 }
 0x428   :  { %v622_v34 = vsel %vm278_vm5, %v606_v54, %v621_v58 }
 0x429   :  { %v580_v62 = vpop.permute.xlu1 %579 }
 0x42a   :  { %v610_v48 = vrot.slane %v580_v62, %v1508_v17 }
 0x42c   :  { %v623_v35 = vsel %vm280_vm6, %v610_v48, %v622_v34 }
 0x42d   :  { %v586_v60 = vpop.permute.xlu1 %585  ;;  %v624_v9 = vsel %vm282_vm7, %v614_v56, %v623_v35 }
 0x42e   :  { %v618_v63 = vrot.slane %v586_v60, %v1508_v17 }
 0x430   :  { %v625_v1 = vsel %vm284_vm8, %v618_v63, %v624_v9 }
 0x431   :  { %v627_v41 = vsel %vm287_vm9, %v625_v1, 0.0 }
 0x432   :  { %628 = vst [vmem:[#allocation6] sm:$0xff] %v627_v41 }
 0x433   :  { %1325 = shalt.err (!%p1322_p12)
}
 0x434   :  { %s1326_s26 = scalar_lea.hbm %s1699_s6, 128 }
 0x435   :  { %p1327_p13 = scmp.ne.s32.totalorder %s1699_s6, %s1326_s26  ;;  %p1330_p0 = scmp.lt.u32.totalorder %s1326_s26, %s1699_s6 }
 0x437   :  { %p1332_p1 = pnand %p1330_p0, %p1327_p13 }
 0x439   :  { %1335 = shalt.err (!%p1332_p1)
}
 0x43a   :  { %1120 = dma.vmem_to_hbm [thread:$0]  %s1118_s22, 128, %s1699_s6, [#allocation5]  }
 0x43b   :  { %s1371_s6 = smov [#allocation7]  }
 0x43c   :  { %s1127_s10 = sshll.u32 %s1371_s6, 4  ;;  %s1128_s10 = int_to_ptr.vmem [resolvable:$true] %s1127_s10 }
 0x43d   :  { %s1336_s11 = scalar_lea.vmem %s1128_s10, 128  ;;  %p1341_p3 = scmp.lt.s32.totalorder %s1128_s10, %s1128_s10 }
 0x43e   :  { %p1337_p2 = scmp.ne.s32.totalorder %s1128_s10, %s1336_s11  ;;  %p1342_p4 = scmp.lt.s32.totalorder %s1336_s11, %s1336_s11 }
 0x440   :  { %p1343_p5 = por %p1342_p4, %p1341_p3 }
 0x442   :  { %p1344_p6 = pnand %p1343_p5, %p1337_p2 }
 0x4d1   :  { %v688_v17 = vpop.f32.mrb[0].mxu1 }
 0x4d2   :  { %v1198_v2 = vpop.f32.mrb[1].mxu1 }
 0x4d3   :  { %v691_v46 = vpop.f32.mrb[2].mxu1 }
 0x4d4   :  { %v1199_v51 = vpop.f32.mrb[3].mxu1 }
 0x4d9   :  { %v744_v0 = vpop.f32.mrb[4].mxu1 }
 0x4da   :  { %v1094_v50 = vrot.slane %v744_v0, 7  ;;  %v1204_v4 = vpop.f32.mrb[5].mxu1 }
 0x4db   :  { %v747_v57 = vpop.f32.mrb[6].mxu1 }
 0x4dc   :  { %v1095_v10 = vsel %vm272_vm2, %v1094_v50, %v688_v17  ;;  %v1205_v42 = vpop.f32.mrb[7].mxu1 }
 0x4dd   :  { %v856_v6 = vpop.f32.mrb[8].mxu0 }
 0x4de   :  { %v1216_v13 = vpop.f32.mrb[9].mxu0  ;;  %v1098_v19 = vrot.slane %v856_v6, 5 }
 0x4df   :  { %v859_v53 = vpop.f32.mrb[10].mxu0 }
 0x4e0   :  { %v1217_v14 = vpop.f32.mrb[11].mxu0 }
 0x4e1   :  { %v800_v59 = vpop.f32.mrb[8].mxu1 }
 0x4e2   :  { %v1096_v15 = vrot.slane %v800_v59, 6  ;;  %v1210_v16 = vpop.f32.mrb[9].mxu1 }
 0x4e3   :  { %v803_v21 = vpop.f32.mrb[10].mxu1 }
 0x4e4   :  { %v1097_v24 = vsel %vm274_vm3, %v1096_v15, %v1095_v10  ;;  %v1211_v25 = vpop.f32.mrb[11].mxu1 }
 0x4e5   :  { %v968_v3 = vpop.f32.mrb[12].mxu0  ;;  %v1099_v26 = vsel %vm276_vm4, %v1098_v19, %v1097_v24 }
 0x4e6   :  { %v1228_v27 = vpop.f32.mrb[13].mxu0  ;;  %v1102_v8 = vrot.slane %v968_v3, 3 }
 0x4e7   :  { %v971_v28 = vpop.f32.mrb[14].mxu0 }
 0x4e8   :  { %v1229_v5 = vpop.f32.mrb[15].mxu0 }
 0x4e9   :  { %v912_v29 = vpop.f32.mrb[12].mxu1 }
 0x4ea   :  { %v1100_v31 = vrot.slane %v912_v29, 4  ;;  %v1222_v18 = vpop.f32.mrb[13].mxu1 }
 0x4eb   :  { %v915_v20 = vpop.f32.mrb[14].mxu1 }
 0x4ec   :  { %v1101_v23 = vsel %vm278_vm5, %v1100_v31, %v1099_v26  ;;  %v1223_v7 = vpop.f32.mrb[15].mxu1 }
 0x4ed   :  { %v1080_v30 = vpop.f32.mrb[16].mxu0  ;;  %v1103_v22 = vsel %vm280_vm6, %v1102_v8, %v1101_v23 }
 0x4ee   :  { %v1240_v33 = vpop.f32.mrb[17].mxu0  ;;  %v1106_v40 = vrot.slane %v1080_v30, 1 }
 0x4ef   :  { %v1083_v36 = vpop.f32.mrb[18].mxu0 }
 0x4f0   :  { %v1241_v37 = vpop.f32.mrb[19].mxu0 }
 0x4f1   :  { %v1024_v12 = vpop.f32.mrb[16].mxu1 }
 0x4f2   :  { %v1104_v38 = vrot.slane %v1024_v12, 2  ;;  %v1234_v39 = vpop.f32.mrb[17].mxu1 }
 0x4f3   :  { %v1027_v43 = vpop.f32.mrb[18].mxu1 }
 0x4f4   :  { %v1105_v44 = vsel %vm282_vm7, %v1104_v38, %v1103_v22  ;;  %v1235_v11 = vpop.f32.mrb[19].mxu1 }
 0x4f5   :  { %v1107_v45 = vsel %vm284_vm8, %v1106_v40, %v1105_v44 }
 0x4f6   :  { %v1109_v47 = vsel %vm94_vm0, %v1107_v45, 0.0 }
 0x4f7   :  { %1110 = vst [vmem:[#allocation7] sm:$0xff] %v1109_v47 }
 0x4f8   :  { %1347 = shalt.err (!%p1344_p6)
}
 0x4f9   :  { %s1348_s14 = scalar_lea.hbm %s1700_s7, 128 }
 0x4fa   :  { %p1349_p7 = scmp.ne.s32.totalorder %s1700_s7, %s1348_s14  ;;  %p1352_p8 = scmp.lt.u32.totalorder %s1348_s14, %s1700_s7 }
 0x4fc   :  { %p1354_p9 = pnand %p1352_p8, %p1349_p7 }
 0x4fe   :  { %1357 = shalt.err (!%p1354_p9)
}
 0x4ff   :  { %1130 = dma.vmem_to_hbm [thread:$0]  %s1128_s10, 128, %s1700_s7, [#allocation8]  }
 0x500   :  { %1360 = dma.done.wait [#allocation5], 128  }
 0x501   :  { %1361 = vsyncadd [#allocation5], 4294967168 }
 0x502   :  { %1362 = dma.done.wait [#allocation8], 128  }
 0x503   :  { %1363 = vsyncadd [#allocation8], 4294967168 }
 0x504   :  { %1137 = vsyncpa [#allocation4], 1 }
 0x505   :  { %1138 = vsyncpa [#allocation5], 1 }
 0x506   :  { %1139 = vsyncpa [#allocation8], 1 }

</bundles_post_ra>
